<compile_context>
chip_gen: v6e
topology: v6e:2x2x1
jax: 0.10.0
libtpu: 0.0.40
codegen_flags: <defaults>
</compile_context>

<pallas_src>
import functools

import jax
import jax.numpy as jnp
from jax.experimental import pallas as pl
from jax.experimental.pallas import tpu as pltpu


def _cce_kernel(x_ref, t_ref, out_ref, *, coef, spatial_size, needs_mask):
    # x_ref:   (1, K, TS) logits (native dtype), class axis leading, spatial on lanes
    # t_ref:   (1, 1, TS) int32 targets
    # out_ref: (1, 1, TS) f32 per-pixel loss = ce + coef * sum_{j!=t} pt_j*log(pt_j)
    x = x_ref[0].astype(jnp.float32)                     # (K, TS)
    t = t_ref[0]                                         # (1, TS)
    K, TS = x.shape

    # numerically stable softmax pieces; reductions are over the small class axis
    m = jnp.max(x, axis=0, keepdims=True)                # (1, TS)
    z = x - m                                            # (K, TS)
    ez = jnp.exp(z)                                      # (K, TS) -- only full-width transcendental
    s = jnp.sum(ez, axis=0, keepdims=True)               # (1, TS)
    lse = m + jnp.log(s)                                 # (1, TS)

    # one-hot of the target via iota compare (gather along class axis)
    cls = jax.lax.broadcasted_iota(jnp.int32, (K, TS), 0)
    onehot = cls == t                                    # (K, TS)
    x_t = jnp.sum(jnp.where(onehot, x, 0.0), axis=0, keepdims=True)  # (1, TS)

    # standard cross entropy: -log_softmax(x)[target]
    ce = lse - x_t                                       # (1, TS)

    # complement term: pt_j = p_j / (1 - p_t) = ez_j / (s - ez_t)
    ez_t = jnp.exp(x_t - m)                              # (1, TS) per-pixel exp
    denom = jnp.maximum(s - ez_t, 1e-30)                 # guard p_t -> 1
    inv_denom = pl.reciprocal(denom, approx=True)        # per-pixel reciprocal (EUP)
    log_denom = jnp.log(denom)                           # per-pixel log
    pt = ez * inv_denom                                  # (K, TS)
    # log(pt_j) = z_j - log(denom): no elementwise log, no 0*log(0) NaN when ez underflows
    comp = jnp.sum(jnp.where(onehot, 0.0, pt * (z - log_denom)),
                   axis=0, keepdims=True)                # (1, TS) = sum_{j!=t} pt_j*log(pt_j)

    loss = ce + coef * comp                              # coef = -gamma / (K - 1)

    if needs_mask:  # trace-time constant; only emitted when spatial size was padded
        pos = pl.program_id(1) * TS + jax.lax.broadcasted_iota(jnp.int32, (1, TS), 1)
        loss = jnp.where(pos < spatial_size, loss, 0.0)

    out_ref[0] = loss


def complement_cross_entropy(x, target, gamma=-1.0, reduction="mean",
                             block_spatial=2048, vmem_limit_bytes=None):
    """x: (N, K, *spatial) logits (NCHW for images), target: (N, *spatial) int classes.

    Returns the ComplementCrossEntropy loss (weight=None, ignore_index=-100 defaults).
    """
    # TODO(synk): per-class `weight` and ignore_index masking are not wired in
    # (module defaults leave them unused).
    N, K = x.shape[0], x.shape[1]
    spatial_shape = x.shape[2:]
    S = 1
    for d in spatial_shape:
        S *= d

    # NCHW-native: (N, K, H, W) -> (N, K, S) is a free reshape (no transpose pass),
    # and the logits keep their native dtype (kernel upcasts on load).
    x3 = x.reshape(N, K, S)
    t3 = target.reshape(N, 1, S).astype(jnp.int32)

    # Lane-dense spatial tile: multiple of 128, capped so the (double-buffered)
    # logits block stays well under the scoped VMEM limit on all generations.
    bytes_per_px = K * x.dtype.itemsize
    max_ts = max(128, ((4 * 1024 * 1024) // bytes_per_px) // 128 * 128)  # ~4 MiB logits block
    ts = min(block_spatial, max_ts)
    ts = max(128, (ts // 128) * 128)
    ts = min(ts, pl.cdiv(S, 128) * 128)      # don't over-tile tiny problems

    s_pad = pl.cdiv(S, ts) * ts
    if s_pad != S:
        # pad spatial axis; padded pixels get class 0 (valid) and are masked in-kernel
        x3 = jnp.pad(x3, ((0, 0), (0, 0), (0, s_pad - S)))
        t3 = jnp.pad(t3, ((0, 0), (0, 0), (0, s_pad - S)))

    coef = float(gamma) * (-1.0 / (K - 1))
    kernel = functools.partial(_cce_kernel, coef=coef, spatial_size=S,
                               needs_mask=(s_pad != S))

    per_px = pl.pallas_call(
        kernel,
        out_shape=jax.ShapeDtypeStruct((N, 1, s_pad), jnp.float32),
        grid_spec=pltpu.PrefetchScalarGridSpec(
            num_scalar_prefetch=0,
            grid=(N, s_pad // ts),
            in_specs=[
                pl.BlockSpec((1, K, ts), lambda n, s: (n, 0, s)),
                pl.BlockSpec((1, 1, ts), lambda n, s: (n, 0, s)),
            ],
            out_specs=pl.BlockSpec((1, 1, ts), lambda n, s: (n, 0, s)),
        ),
        compiler_params=pltpu.CompilerParams(
            dimension_semantics=("parallel", "parallel"),
            vmem_limit_bytes=vmem_limit_bytes),
    )(x3, t3)

    if reduction == "none":
        return per_px[:, 0, :S].reshape((N,) + spatial_shape)
    total = jnp.sum(per_px)          # padded lanes were zeroed in-kernel
    if reduction == "sum":
        return total
    return total / (N * S)           # 'mean' (default)


def _reference(x, target, gamma=-1.0):
    p = jax.nn.softmax(x, axis=1)
    logp = jax.nn.log_softmax(x, axis=1)
    onehot = jax.nn.one_hot(target, x.shape[1], axis=1, dtype=x.dtype)
    ce = -jnp.sum(onehot * logp, axis=1)
    p_t = jnp.sum(onehot * p, axis=1, keepdims=True)
    pt = p / (1.0 - p_t)
    comp = (-1.0 / (x.shape[1] - 1)) * pt * jnp.log(pt)
    comp = jnp.where(onehot > 0, 0.0, comp)
    comp = jnp.sum(comp, axis=1)
    return jnp.mean(ce) + gamma * jnp.mean(comp)


if __name__ == "__main__":
    key = jax.random.PRNGKey(0)
    kx, kt = jax.random.split(key)

    # case 1: spatial size divisible by the tile
    N, K, H, W = 2, 4, 16, 16
    x = jax.random.normal(kx, (N, K, H, W), dtype=jnp.float32)
    target = jax.random.randint(kt, (N, H, W), 0, K, dtype=jnp.int32)
    loss = jax.block_until_ready(complement_cross_entropy(x, target, gamma=-1.0))
    ref = _reference(x, target, gamma=-1.0)
    assert jnp.allclose(loss, ref, atol=2e-3, rtol=2e-3), (loss, ref)

    # case 2: non-divisible spatial size exercises the padding + in-kernel mask path
    H2, W2 = 15, 15
    x2 = jax.random.normal(kx, (N, K, H2, W2), dtype=jnp.float32)
    t2 = jax.random.randint(kt, (N, H2, W2), 0, K, dtype=jnp.int32)
    loss2 = jax.block_until_ready(complement_cross_entropy(x2, t2, gamma=-1.0))
    ref2 = _reference(x2, t2, gamma=-1.0)
    assert jnp.allclose(loss2, ref2, atol=2e-3, rtol=2e-3), (loss2, ref2)

    print("KERNEL_OK")
</pallas_src>

<mosaic_0001>
module attributes {stable_mosaic.version = 11 : i64} {
  func.func @_cce_kernel(%arg0: i32, %arg1: i32, %arg2: memref<1x4x256xf32, #tpu.memory_space<vmem>>, %arg3: memref<1x1x256xi32, #tpu.memory_space<vmem>>, %arg4: memref<1x1x256xf32, #tpu.memory_space<vmem>>) attributes {dimension_semantics = [#tpu.dimension_semantics<parallel>, #tpu.dimension_semantics<parallel>], iteration_bounds = array<i64: 2, 1>, scalar_prefetch = 0 : i64, scratch_operands = 0 : i64, tpu.core_type = #tpu.core_type<tc>, window_params = [{transform_indices = @transform_0, window_bounds = array<i64: 1, 4, 256>}, {transform_indices = @transform_1, window_bounds = array<i64: 1, 1, 256>}, {transform_indices = @transform_2, window_bounds = array<i64: 1, 1, 256>}]} {
    %c0 = arith.constant 0 : index
    %c0_0 = arith.constant 0 : index
    %c0_1 = arith.constant 0 : index
    %0 = vector.load %arg2[%c0, %c0_0, %c0_1] : memref<1x4x256xf32, #tpu.memory_space<vmem>>, vector<1x4x256xf32>
    %1 = vector.shape_cast %0 : vector<1x4x256xf32> to vector<4x256xf32>
    %c0_2 = arith.constant 0 : index
    %c0_3 = arith.constant 0 : index
    %c0_4 = arith.constant 0 : index
    %2 = vector.load %arg3[%c0_2, %c0_3, %c0_4] : memref<1x1x256xi32, #tpu.memory_space<vmem>>, vector<1x1x256xi32>
    %3 = vector.shape_cast %2 : vector<1x1x256xi32> to vector<1x256xi32>
    %cst = arith.constant dense<0xFF800000> : vector<256xf32>
    %4 = vector.multi_reduction <maximumf>, %1, %cst [0] : vector<4x256xf32> to vector<256xf32>
    %5 = vector.shape_cast %4 : vector<256xf32> to vector<1x256xf32>
    %6 = vector.broadcast %5 : vector<1x256xf32> to vector<4x256xf32>
    %7 = arith.subf %1, %6 : vector<4x256xf32>
    %8 = math.exp %7 : vector<4x256xf32>
    %cst_5 = arith.constant dense<0.000000e+00> : vector<256xf32>
    %9 = vector.multi_reduction <add>, %8, %cst_5 [0] : vector<4x256xf32> to vector<256xf32>
    %10 = vector.shape_cast %9 : vector<256xf32> to vector<1x256xf32>
    %11 = math.log %10 : vector<1x256xf32>
    %12 = arith.addf %5, %11 : vector<1x256xf32>
    %13 = tpu.iota {dimensions = array<i32: 0>} : vector<4x256xi32>
    %14 = vector.broadcast %3 : vector<1x256xi32> to vector<4x256xi32>
    %15 = arith.cmpi eq, %13, %14 : vector<4x256xi32>
    %cst_6 = arith.constant 0.000000e+00 : f32
    %16 = vector.broadcast %cst_6 : f32 to vector<4x256xf32>
    %17 = arith.select %15, %1, %16 : vector<4x256xi1>, vector<4x256xf32>
    %cst_7 = arith.constant dense<0.000000e+00> : vector<256xf32>
    %18 = vector.multi_reduction <add>, %17, %cst_7 [0] : vector<4x256xf32> to vector<256xf32>
    %19 = vector.shape_cast %18 : vector<256xf32> to vector<1x256xf32>
    %20 = arith.subf %12, %19 : vector<1x256xf32>
    %21 = arith.subf %19, %5 : vector<1x256xf32>
    %22 = math.exp %21 : vector<1x256xf32>
    %23 = arith.subf %10, %22 : vector<1x256xf32>
    %cst_8 = arith.constant 1.000000e-30 : f32
    %24 = vector.broadcast %cst_8 : f32 to vector<1x256xf32>
    %25 = arith.maximumf %23, %24 : vector<1x256xf32>
    %26 = tpu.reciprocal %25 {approx = true} : vector<1x256xf32> -> vector<1x256xf32>
    %27 = math.log %25 : vector<1x256xf32>
    %28 = vector.broadcast %26 : vector<1x256xf32> to vector<4x256xf32>
    %29 = arith.mulf %8, %28 : vector<4x256xf32>
    %30 = vector.broadcast %27 : vector<1x256xf32> to vector<4x256xf32>
    %31 = arith.subf %7, %30 : vector<4x256xf32>
    %32 = arith.mulf %29, %31 : vector<4x256xf32>
    %cst_9 = arith.constant 0.000000e+00 : f32
    %33 = vector.broadcast %cst_9 : f32 to vector<4x256xf32>
    %34 = arith.select %15, %33, %32 : vector<4x256xi1>, vector<4x256xf32>
    %cst_10 = arith.constant dense<0.000000e+00> : vector<256xf32>
    %35 = vector.multi_reduction <add>, %34, %cst_10 [0] : vector<4x256xf32> to vector<256xf32>
    %36 = vector.shape_cast %35 : vector<256xf32> to vector<1x256xf32>
    %cst_11 = arith.constant 0.333333343 : f32
    %37 = vector.broadcast %cst_11 : f32 to vector<1x256xf32>
    %38 = arith.mulf %37, %36 : vector<1x256xf32>
    %39 = arith.addf %20, %38 : vector<1x256xf32>
    %c0_12 = arith.constant 0 : index
    %c0_13 = arith.constant 0 : index
    %c0_14 = arith.constant 0 : index
    %40 = vector.load %arg4[%c0_12, %c0_13, %c0_14] : memref<1x1x256xf32, #tpu.memory_space<vmem>>, vector<1x1x256xf32>
    %41 = vector.shape_cast %40 : vector<1x1x256xf32> to vector<1x256xf32>
    %42 = vector.shape_cast %39 : vector<1x256xf32> to vector<1x1x256xf32>
    tpu.vector_store %arg4[%c0_12, %c0_13, %c0_14], %42 {strides = array<i32>} : memref<1x1x256xf32, #tpu.memory_space<vmem>>, vector<1x1x256xf32>,
    return
  }
  func.func @transform_0(%arg0: i32, %arg1: i32) -> (i32, i32, i32) {
    %c0_i32 = arith.constant 0 : i32
    %c0_i32_0 = arith.constant 0 : i32
    return %arg0, %c0_i32, %arg1 : i32, i32, i32
  }
  func.func @transform_1(%arg0: i32, %arg1: i32) -> (i32, i32, i32) {
    %c0_i32 = arith.constant 0 : i32
    %c0_i32_0 = arith.constant 0 : i32
    return %arg0, %c0_i32, %arg1 : i32, i32, i32
  }
  func.func @transform_2(%arg0: i32, %arg1: i32) -> (i32, i32, i32) {
    %c0_i32 = arith.constant 0 : i32
    %c0_i32_0 = arith.constant 0 : i32
    return %arg0, %c0_i32, %arg1 : i32, i32, i32
  }
}

</mosaic_0001>

<bundles_post_ra>
// kernel: tpu_custom_call.1
= control target key start
LH: loop header
LB: loop body
LE: loop exit
PB: predicated region body
PF: predicated region fallthrough
CT: control target
= control target key end

     0   :  { %7 = vsyncpa [#allocation3], 0  ;;  %s994_s0 = inlined_call_operand.hbm [shape: f32[2,4,256], index: 0, kind: input, shape index: {}]   ;;  %s995_s1 = inlined_call_operand.hbm [shape: s32[2,1,256], index: 1, kind: input, shape index: {}]   ;;  %s996_s2 = inlined_call_operand.hbm [shape: f32[2,1,256], index: 2, kind: output, shape index: {}]  }
   0x1   :  { %9 = vsyncpa [#allocation3 + $0x1], 0 }
   0x2   :  { %10 = vsyncpa [#allocation6], 0 }
   0x3   :  { %12 = vsyncpa [#allocation6 + $0x1], 0 }
   0x4   :  { %13 = vsyncpa [#allocation4], 0 }
   0x5   :  { %15 = vsyncpa [#allocation4 + $0x1], 0  ;;  %s773_s9 = smov 0   ;;  %s775_s10 = smov 0  }
   0x6   :  { %s777_s11 = smov 0   ;;  %s779_s12 = smov 0  }
   0x7   :  { %s781_s13 = smov 0   ;;  %s783_s14 = smov 0  }
   0x8 LB: > { %s503_s15 = sadd.s32 4294967295, %s752_s14   ;;  %s504_s16 = sadd.s32 4294967294, %s752_s14   ;;  %s752_s14 = sphi %s783_s14, %s21_s14   ;;  %s748_s13 = sphi %s781_s13, %s1008_s13   ;;  %s744_s12 = sphi %s779_s12, %s1007_s12   ;;  %s740_s11 = sphi %s777_s11, %s1006_s11   ;;  %s736_s10 = sphi %s775_s10, %s1005_s10   ;;  %s732_s9 = sphi %s773_s9, %s1004_s9  }
   0x9   : > { %s33_s17 = sadd.s32 1, %s748_s13  ;;  %s42_s18 = sadd.s32 1, %s740_s11 }
   0xa   : > { %p35_p0 = scmp.ge.s32.totalorder %s33_s17, 2  ;;  %p49_p1 = scmp.ne.s32.totalorder %s740_s11, %s736_s10 }
   0xb   : > { %p50_p2 = scmp.eq.s32.totalorder %s752_s14, 0  ;;  %p55_p3 = scmp.ne.s32.totalorder %s736_s10, %s732_s9 }
   0xc   : > { %s1010_s17 = smov (%p35_p0, %s33_s17), 0  ;;  %p56_p5 = scmp.eq.s32.totalorder %s503_s15, 0 }
   0xd   : > { %p814_p4 = por %p50_p2, %p49_p1  ;;  %s37_s20 = ssub.s32 %s748_s13, %s1010_s17 }
   0xe   : > { %p109_p6 = scmp.eq.s32.totalorder %s503_s15, 1  ;;  %p40_p7 = scmp.eq.s32.totalorder %s37_s20, 0 }
   0xf   : > { %p820_p8 = por %p56_p5, %p55_p3  ;;  %p115_p10 = scmp.eq.s32.totalorder %s504_s16, 1 }
  0x10   : > { %p824_p9 = por %p109_p6, %p49_p1  ;;  %p542_p13 = scmp.lt.s32.totalorder %s752_s14, 2 }
  0x11   : > { %s829_s23 = scalar_select %p40_p7, %s740_s11, %s42_s18  }
  0x12   : > { %p831_p11 = por %p115_p10, %p55_p3  ;;  %s838_s25 = sand.u32 1, %s740_s11  }
  0x13   : > { %s507_s26 = sshll.u32 %s838_s25, 3  ;;  %s522_s27 = sshll.u32 %s748_s13, 7 }
  0x14   : > { %s147_s30 = scalar_lea.hbm %s994_s0, %s522_s27  ;;  %s139_s3 = scalar_lea.vmem [#allocation2], %s507_s26 }
  0x15   : > { %s149_s4 = sshll.u32 %s139_s3, 4  ;;  %p847_p0 = pnand %p542_p13, %p814_p4  ;;  %s150_s4 = int_to_ptr.vmem [resolvable:$true] %s149_s4 }
  0x16   : > { %p513_p1 = scmp.ge.s32.totalorder %s752_s14, 1  ;;  %p175_p2 = scmp.lt.s32.totalorder %s752_s14, 3 }
  0x17   : > { %s136_s6 = scalar_lea.sflag [#allocation3], %s838_s25  ;;  %p614_p3 = pneg %p847_p0 }
  0x18   : > { %s625_s7 = scalar_lea.vmem %s150_s4, 128  ;;  %s754_s8 = smov [#allocation2]  }
  0x19   : > { %p626_p5 = scmp.ne.s32.totalorder %s150_s4, %s625_s7  ;;  %s630_s15 = sshll.u32 %s754_s8, 4  ;;  %s631_s15 = int_to_ptr.vmem [resolvable:$false] %s630_s15 }
  0x1a   : > { %s632_s16 = scalar_lea.vmem %s631_s15, 256  ;;  %p633_p4 = scmp.lt.s32.totalorder %s150_s4, %s631_s15 }
  0x1b   : > { %p628_p6 = pnand %p626_p5, %p614_p3  ;;  %p634_p10 = scmp.lt.s32.totalorder %s632_s16, %s625_s7 }
  0x1d   : > { %p629_p7 = pneg %p628_p6  ;;  %p635_p13 = por %p634_p10, %p633_p4 }
  0x1f   : > { %p636_p12 = pnand %p635_p13, %p629_p7 }
  0x21   : > { %639 = shalt.err (!%p636_p12)
}
  0x22   : > { %534 = dma.hbm_to_vmem [thread:$0]  (!%p847_p0), %s147_s30, 128, %s150_s4, %s136_s6  }
  0x23   : > { %p865_p5 = pnand %p513_p1, %p175_p2  ;;  %s510_s19 = sshll.u32 %s838_s25, 1 }
  0x24   : > { %s523_s20 = sshll.u32 %s748_s13, 5  ;;  %s160_s29 = scalar_lea.vmem [#allocation5], %s510_s19 }
  0x25   : > { %s168_s28 = scalar_lea.hbm %s995_s1, %s523_s20  ;;  %s170_s3 = sshll.u32 %s160_s29, 4  ;;  %s171_s3 = int_to_ptr.vmem [resolvable:$true] %s170_s3 }
  0x26   : > { %s157_s7 = scalar_lea.sflag [#allocation6], %s838_s25  ;;  %s653_s8 = scalar_lea.vmem %s171_s3, 32 }
  0x27   : > { %p654_p12 = scmp.ne.s32.totalorder %s171_s3, %s653_s8  ;;  %s755_s30 = smov [#allocation5]  }
  0x28   : > { %s658_s4 = sshll.u32 %s755_s30, 4  ;;  %s659_s4 = int_to_ptr.vmem [resolvable:$false] %s658_s4 }
  0x29   : > { %p656_p6 = pnand %p654_p12, %p614_p3  ;;  %s660_s6 = scalar_lea.vmem %s659_s4, 64 }
  0x2a   : > { %p661_p1 = scmp.lt.s32.totalorder %s171_s3, %s659_s4  ;;  %p662_p2 = scmp.lt.s32.totalorder %s660_s6, %s653_s8 }
  0x2b   : > { %p657_p7 = pneg %p656_p6 }
  0x2c   : > { %p663_p4 = por %p662_p2, %p661_p1 }
  0x2e   : > { %p664_p10 = pnand %p663_p4, %p657_p7 }
  0x30   : > { %667 = shalt.err (!%p664_p10)
}
  0x31   : > { %537 = dma.hbm_to_vmem [thread:$0]  (!%p847_p0), %s168_s28, 32, %s171_s3, %s157_s7  }
  0x32   : > { %179 = sbr.rel (%p865_p5) target bundleno = 176 (0xb0), region = 28  ;;  %s883_s25 = sand.u32 (!%p865_p5), 1, %s736_s10  }
  0x33   : > { %s514_s15 = sshll.u32 (!%p865_p5), %s883_s25, 3  ;;  %s182_s16 = scalar_lea.sflag (!%p865_p5), [#allocation3], %s883_s25 }
  0x34   : > { %s185_s19 = scalar_lea.vmem (!%p865_p5), [#allocation2], %s514_s15 }
  0x37   : > { %719 = dma.done.wait (%p820_p8), %s182_s16, 128  }
  0x38   : > { %721 = vsyncadd (%p820_p8), %s182_s16, 4294967168  ;;  %s515_s5 = sshll.u32 %s883_s25, 1  ;;  %s191_s18 = scalar_lea.sflag [#allocation6], %s883_s25 }
  0x39   : > { %s194_s20 = scalar_lea.vmem [#allocation5], %s515_s5 }
  0x3a   : > { %723 = dma.done.wait (%p820_p8), %s191_s18, 32  }
  0x3b   : > { %725 = vsyncadd (%p820_p8), %s191_s18, 4294967264  ;;  %v273_v0 = vlaneseq  ;;  %vm228_vm0 = vcmask 1043456   ;;  %v223_v4 = vld [vmem:[%s185_s19] sm:$0xff]  ;;  %v224_v5 = vld [vmem:[%s194_s20] sm:$0x3]  ;;  %s219_s21 = scalar_lea.vmem [#allocation7], %s515_s5 }
  0x3c   : > { %v226_v6 = vcombine.high %v223_v4, %v223_v4  ;;  %v229_v7 = vsel %vm228_vm0, %v223_v4, -inf  ;;  %s393_s26 = sshll.u32 %s219_s21, 4  ;;  %s524_s27 = sshll.u32 %s744_s12, 5  ;;  %s394_s26 = int_to_ptr.vmem [resolvable:$true] %s393_s26 }
  0x3d   : > { %v900_v1 = vshrl.u32 %v273_v0, 7  ;;  %v230_v10 = vrot.slane %v229_v7, 4  ;;  %vm373_vm3 = vcmp.lt.s32.totalorder %v273_v0, 256  ;;  %s391_s3 = scalar_lea.hbm %s996_s2, %s524_s27  ;;  %s377_s7 = scalar_lea.sflag [#allocation4], %s883_s25 }
  0x3e   : > { %v236_v11 = vsel %vm228_vm0, %v226_v6, -inf  ;;  %s668_s8 = scalar_lea.vmem %s394_s26, 32  ;;  %s757_s30 = smov [#allocation7]  }
  0x3f   : > { %v277_v2 = vsub.s32 0, %v900_v1  ;;  %v281_v3 = vsub.s32 1, %v900_v1  ;;  %v231_v12 = vmax.f32 %v229_v7, %v230_v10  ;;  %v237_v13 = vrot.slane %v236_v11, 4  ;;  %p669_p8 = scmp.ne.s32.totalorder %s394_s26, %s668_s8  ;;  %s672_s4 = sshll.u32 %s757_s30, 4  ;;  %s673_s4 = int_to_ptr.vmem [resolvable:$false] %s672_s4 }
  0x40   : > { %s674_s12 = scalar_lea.vmem %s673_s4, 64  ;;  %p675_p13 = scmp.lt.s32.totalorder %s394_s26, %s673_s4 }
  0x41   : > { %v905_v8 = vrot.slane %v224_v5, %v277_v2  ;;  %v907_v9 = vrot.slane %v224_v5, %v281_v3  ;;  %v232_v18 = vrot.slane %v231_v12, 2  ;;  %v238_v19 = vmax.f32 %v236_v11, %v237_v13  ;;  %p670_p0 = pnand %p669_p8, %p824_p9  ;;  %p676_p5 = scmp.lt.s32.totalorder %s674_s12, %s668_s8 }
  0x43   : > { %vm283_vm1 = vcmp.eq.s32.totalorder %v900_v1, %v905_v8  ;;  %vm284_vm2 = vcmp.eq.s32.totalorder %v900_v1, %v907_v9  ;;  %v233_v22 = vmax.f32 %v231_v12, %v232_v18  ;;  %v239_v23 = vrot.slane %v238_v19, 2  ;;  %p671_p3 = pneg %p670_p0  ;;  %p677_p12 = por %p676_p5, %p675_p13 }
  0x44   : > { %v285_v14 = vsel %vm283_vm1, %v223_v4, 0.0  ;;  %v286_v15 = vsel %vm284_vm2, %v226_v6, 0.0 }
  0x45   : > { %v287_v16 = vsel %vm228_vm0, %v285_v14, 0.0  ;;  %v294_v17 = vsel %vm228_vm0, %v286_v15, 0.0  ;;  %v234_v26 = vrot.slane %v233_v22, 1  ;;  %v240_v27 = vmax.f32 %v238_v19, %v239_v23  ;;  %p678_p6 = pnand %p677_p12, %p671_p3 }
  0x46   : > { %v288_v20 = vrot.slane %v287_v16, 4  ;;  %v295_v21 = vrot.slane %v294_v17, 4 }
  0x47   : > { %v922_v30 = vmax.f32 %v233_v22, %v234_v26  ;;  %v241_v31 = vrot.slane %v240_v27, 1 }
  0x48   : > { %v289_v24 = vadd.f32 %v288_v20, %v287_v16  ;;  %v296_v25 = vadd.f32 %v295_v21, %v294_v17 }
  0x49   : > { %v924_v33 = vmax.f32 %v240_v27, %v241_v31 }
  0x4a   : > { %v290_v28 = vrot.slane %v289_v24, 2  ;;  %v297_v29 = vrot.slane %v296_v25, 2 }
  0x4b   : > { %v245_v35 = vcombine.low %v922_v30, %v924_v33 }
  0x4c   : > { %v291_v32 = vadd.f32 %v290_v28, %v289_v24  ;;  %v298_v34 = vadd.f32 %v297_v29, %v296_v25 }
  0x4d   : > { %v247_v37 = vsub.f32 %v223_v4, %v245_v35 }
  0x4e   : > { %v292_v36 = vrot.slane %v291_v32, 1  ;;  %v299_v38 = vrot.slane %v298_v34, 1 }
  0x4f   : > { %v248_v39 = vmul.f32 1.442695, %v247_v37 }
  0x50   : > { %v928_v40 = vadd.f32 %v292_v36, %v291_v32  ;;  %v930_v41 = vadd.f32 %v299_v38, %v298_v34 }
  0x51   : > { %594 = vpow2.f32 %v248_v39  ;;  %v756_v39 = vmov 1966171168  }
  0x52   : > { %v303_v42 = vsub.f32 %v928_v40, %v922_v30  ;;  %v304_v43 = vsub.f32 %v930_v41, %v924_v33 }
  0x54   : > { %v305_v44 = vmul.f32 1.442695, %v303_v42  ;;  %v307_v45 = vmul.f32 1.442695, %v304_v43  ;;  %v357_v42 = vunpack.c.l.s4 %v756_v39 }
  0x56   : > { %596 = vpow2.f32 %v305_v44 }
  0x57   : > { %598 = vpow2.f32 %v307_v45 }
  0x5e   : > { %v595_v46 = vpop.eup %594 }
  0x5f   : > { %v251_v47 = vcombine.high %v595_v46, %v595_v46  ;;  %v253_v48 = vsel %vm228_vm0, %v595_v46, 0.0 }
  0x60   : > { %v254_v49 = vrot.slane %v253_v48, 4 }
  0x61   : > { %v260_v50 = vsel %vm228_vm0, %v251_v47, 0.0 }
  0x62   : > { %v255_v51 = vadd.f32 %v254_v49, %v253_v48  ;;  %v261_v52 = vrot.slane %v260_v50, 4 }
  0x63   : > { %v597_v59 = vpop.eup %596 }
  0x64   : > { %v256_v53 = vrot.slane %v255_v51, 2  ;;  %v262_v54 = vadd.f32 %v261_v52, %v260_v50  ;;  %v599_v62 = vpop.eup %598 }
  0x66   : > { %v257_v55 = vadd.f32 %v256_v53, %v255_v51  ;;  %v263_v56 = vrot.slane %v262_v54, 2 }
  0x68   : > { %v258_v57 = vrot.slane %v257_v55, 1  ;;  %v264_v58 = vadd.f32 %v263_v56, %v262_v54 }
  0x6a   : > { %v259_v60 = vadd.f32 %v258_v57, %v257_v55  ;;  %v265_v61 = vrot.slane %v264_v58, 1 }
  0x6c   : > { %v266_v63 = vadd.f32 %v265_v61, %v264_v58  ;;  %v309_v2 = vsub.f32 %v259_v60, %v597_v59 }
  0x6e   : > { %v310_v3 = vsub.f32 %v266_v63, %v599_v62  ;;  %v311_v4 = vmax.f32 %v309_v2, 1e-30 }
  0x70   : > { %v312_v5 = vmax.f32 %v310_v3, 1e-30  ;;  %600 = vrcp.f32 %v311_v4 }
  0x71   : > { %602 = vlog2.f32 %v311_v4 }
  0x72   : > { %604 = vrcp.f32 %v312_v5 }
  0x73   : > { %606 = vlog2.f32 %v312_v5 }
  0x74   : > { %608 = vlog2.f32 %v259_v60 }
  0x75   : > { %610 = vlog2.f32 %v266_v63 }
  0x7d   : > { %v601_v6 = vpop.eup %600 }
  0x7e   : > { %v603_v7 = vpop.eup %602 }
  0x7f   : > { %v605_v10 = vpop.eup %604  ;;  %v316_v11 = vmul.f32 0.6931472, %v603_v7 }
  0x80   : > { %v607_v12 = vpop.eup %606  ;;  %v321_v13 = vcombine.low %v601_v6, %v605_v10 }
  0x81   : > { %v318_v14 = vmul.f32 0.6931472, %v607_v12  ;;  %v609_v21 = vpop.eup %608 }
  0x82   : > { %v323_v15 = vmul.f32 %v595_v46, %v321_v13  ;;  %v611_v25 = vpop.eup %610  ;;  %v268_v27 = vmul.f32 0.6931472, %v609_v21 }
  0x83   : > { %v326_v16 = vcombine.low %v316_v11, %v318_v14  ;;  %v270_v31 = vmul.f32 0.6931472, %v611_v25 }
  0x84   : > { %v271_v8 = vadd.f32 %v268_v27, %v922_v30  ;;  %v358_v30 = vunpack.c.0.s8 %v357_v42 }
  0x85   : > { %v328_v17 = vsub.f32 %v247_v37, %v326_v16  ;;  %v272_v37 = vadd.f32 %v270_v31, %v924_v33 }
  0x86   : > { %v301_v43 = vsub.f32 %v271_v8, %v928_v40  ;;  %v361_v51 = vsub.s32 %v358_v30, %v900_v1 }
  0x87   : > { %v329_v18 = vmul.f32 %v328_v17, %v323_v15  ;;  %v302_v46 = vsub.f32 %v272_v37, %v930_v41 }
  0x89   : > { %v331_v19 = vcombine.high %v329_v18, %v329_v18  ;;  %v333_v20 = vsel %vm283_vm1, 0.0, %v329_v18 }
  0x8a   : > { %v335_v22 = vsel %vm228_vm0, %v333_v20, 0.0 }
  0x8b   : > { %v334_v23 = vsel %vm284_vm2, 0.0, %v331_v19  ;;  %v336_v24 = vrot.slane %v335_v22, 4 }
  0x8c   : > { %v342_v26 = vsel %vm228_vm0, %v334_v23, 0.0 }
  0x8d   : > { %v337_v28 = vadd.f32 %v336_v24, %v335_v22  ;;  %v343_v29 = vrot.slane %v342_v26, 4 }
  0x8f   : > { %v338_v32 = vrot.slane %v337_v28, 2  ;;  %v344_v34 = vadd.f32 %v343_v29, %v342_v26 }
  0x91   : > { %v339_v35 = vadd.f32 %v338_v32, %v337_v28  ;;  %v345_v36 = vrot.slane %v344_v34, 2 }
  0x93   : > { %v340_v38 = vrot.slane %v339_v35, 1  ;;  %v346_v9 = vadd.f32 %v345_v36, %v344_v34 }
  0x95   : > { %v341_v44 = vadd.f32 %v340_v38, %v339_v35  ;;  %v347_v45 = vrot.slane %v346_v9, 1 }
  0x97   : > { %v348_v47 = vadd.f32 %v347_v45, %v346_v9  ;;  %v349_v48 = vmul.f32 0.33333334, %v341_v44 }
  0x99   : > { %v350_v49 = vmul.f32 0.33333334, %v348_v47  ;;  %v351_v50 = vadd.f32 %v349_v48, %v301_v43 }
  0x9b   : > { %v352_v33 = vadd.f32 %v350_v49, %v302_v46 }
  0x9d   : > { %v355_v52 = vcombine.low %v351_v50, %v352_v33 }
  0x9f   : > { %v362_v40 = vrot.slane %v355_v52, %v361_v51 }
  0xa1   : > { %v369_v53 = vrot.slane %v362_v40, %v361_v51 }
  0xa3   : > { %375 = vst.msk [vmem:[%s219_s21] sm:$0x3] %vm373_vm3, %v369_v53 }
  0xa4   : > { %681 = shalt.err (!%p678_p6)
}
  0xa5   : > { %s682_s6 = scalar_lea.hbm %s391_s3, 32  ;;  %s686_s16 = scalar_lea.hbm %s996_s2, 64 }
  0xa6   : > { %p683_p7 = scmp.ne.s32.totalorder %s391_s3, %s682_s6  ;;  %p687_p4 = scmp.lt.s32.totalorder %s391_s3, %s996_s2 }
  0xa7   : > { %p688_p10 = scmp.lt.s32.totalorder %s686_s16, %s682_s6 }
  0xa8   : > { %p684_p1 = pnand %p683_p7, %p824_p9 }
  0xa9   : > { %p689_p8 = por %p688_p10, %p687_p4 }
  0xaa   : > { %p685_p2 = pneg %p684_p1 }
  0xac   : > { %p690_p0 = pnand %p689_p8, %p685_p2 }
  0xae   : > { %693 = shalt.err (!%p690_p0)
}
  0xaf   : > { %529 = dma.vmem_to_hbm [thread:$0]  (%p824_p9), %s394_s26, 32, %s391_s3, %s377_s7  }
  0xb0 PF: > { %s405_s18 = sand.u32 1, %s732_s9   ;;  %p1003_p3 = scmp.ge.s32.totalorder %s752_s14, 2 }
  0xb1   : > { %s406_s20 = scalar_lea.sflag [#allocation4], %s405_s18 }
  0xb2   : > { %p539_p13 = pnand %p1003_p3, %p831_p11 }
  0xb4   : > { %p540_p5 = pneg %p539_p13 }
  0xb6   : > { %727 = dma.done.wait (%p540_p5), %s406_s20, 32  }
  0xb7   : > { %729 = vsyncadd (%p540_p5), %s406_s20, 4294967264  ;;  %s21_s14 = sadd.s32 1, %s752_s14   ;;  %s1004_s9 = smov %s736_s10 }
  0xb8   : > { %p18_p12 = scmp.ge.s32.totalorder %s21_s14, 4   ;;  %s1005_s10 = smov %s740_s11 }
  0xb9   : > { %s1006_s11 = smov %s829_s23  ;;  %s1007_s12 = smov %s748_s13 }
  0xba   : > { %s1008_s13 = smov %s1010_s17  ;;  %20 = sbr.rel (!%p18_p12) target bundleno = 8 (0x8), region = 86 }
  0xbf   :  { %411 = vsyncpa [#allocation3], 1 }
  0xc0   :  { %413 = vsyncpa [#allocation3 + $0x1], 1 }
  0xc1   :  { %414 = vsyncpa [#allocation6], 1 }
  0xc2   :  { %416 = vsyncpa [#allocation6 + $0x1], 1 }
  0xc3   :  { %417 = vsyncpa [#allocation4], 1 }
  0xc4   :  { %419 = vsyncpa [#allocation4 + $0x1], 1 }

</bundles_post_ra>
